<compile_context>
chip_gen: v7x
topology: tpu7x:2x2x1
jax: 0.10.0
libtpu: 0.0.40
codegen_flags: <defaults>
</compile_context>

<pallas_src>
import functools

import jax
import jax.numpy as jnp
from jax.experimental import pallas as pl
from jax.experimental.pallas import tpu as pltpu

NUM_ASPECTS = 5

_BLOCK_B_MAX = 4096
# Per-tile working-set budget (double-buffered inputs + f32 temporaries); keeps
# every configuration comfortably under the 32 MiB scoped VMEM limit that is
# safe on all of v5e / v6e / v7x.
_VMEM_TILE_BUDGET = 18 * 1024 * 1024


def _choose_block_b(B, D, rep_itemsize):
    """Derive the batch tile from a VMEM byte budget (not a hard-coded constant)."""
    d_pad = pl.cdiv(D, 128) * 128
    per_row = (2 * 2 * d_pad * rep_itemsize   # double-buffered u/v input streams
               + 2 * 128 * 4                  # double-buffered packed side operands
               + 4 * d_pad * 4)               # in-kernel f32 temporaries (u, v, wrep, u*v*wrep)
    bb = min(int(_VMEM_TILE_BUDGET // per_row), _BLOCK_B_MAX)
    bb = max(8, (bb // 8) * 8)
    if bb >= B:
        return B
    # Best effort: even number of grid steps so the two TensorCores on v7x get
    # equal work under dimension_semantics=("parallel",).  No effect on v5e/v6e.
    n = pl.cdiv(B, bb)
    if n % 2 == 1:
        bb_even = ((pl.cdiv(B, n + 1) + 7) // 8) * 8
        if 8 <= bb_even < B and pl.cdiv(B, bb_even) % 2 == 0:
            bb = bb_even
    return bb


def _rating_kernel(urep_ref,   # VMEM (BB, D)    reps, native dtype (f32 / bf16)
                   irep_ref,   # VMEM (BB, D)    reps, native dtype
                   side_ref,   # VMEM (BB, K+1)  f32: [:, :K]=user_imp*item_imp, [:, K]=summed offsets
                   exp_ref,    # VMEM (K, D)     f32 0/1 aspect->hidden expansion (grid-constant)
                   out_ref,    # VMEM (1, 1, BB) f32 lane-dense output row
                   *, num_aspects):
    K = num_aspects

    # Up-cast in VMEM (keeps bf16 on the HBM wire).  A bf16 multiply-first path
    # would shave VALU ops on v6e/v7x, but the kernel is HBM-bound after the
    # restructure and f32 keeps numerics identical on v5e, so we cast first.
    u = urep_ref[...].astype(jnp.float32)            # (BB, D)
    v = irep_ref[...].astype(jnp.float32)            # (BB, D)

    side = side_ref[...]                             # (BB, K+1) f32
    w = side[:, :K]                                  # (BB, K)   importance products
    off = side[:, K]                                 # (BB,)     user+item+global offsets

    # Broadcast the per-aspect weights over the hidden dim on the (idle) MXU:
    # wrep[b, d] = w[b, d // H].
    wrep = jnp.dot(w, exp_ref[...], preferred_element_type=jnp.float32)   # (BB, D)

    # Fused weighted per-row reduce: two VPU multiplies + one XLU lane reduce.
    pred = jnp.sum(u * v * wrep, axis=-1) + off      # (BB,)

    out_ref[...] = pred.reshape(1, 1, -1)            # lane-dense (1, 1, BB) store


def rating_prediction(user_rep, item_rep, user_imp, item_imp, uids, iids,
                      uid_offset_table, iid_offset_table, global_offset,
                      *, block_b=None):
    """Pallas implementation of RatingPrediction.forward (eval mode)."""
    B, K, H = user_rep.shape
    assert K == NUM_ASPECTS
    D = K * H
    rep_itemsize = user_rep.dtype.itemsize

    # Tiny per-row glue (embedding gathers, weight/offset folds) stays in JAX:
    # these touch (B,K)/(B,1) arrays, not the big reps, so no meaningful extra
    # HBM traffic, and they remove ~2 * K * BB one-lane VALU ops per tile.
    user_off = jnp.take(uid_offset_table, uids, axis=0)                     # (B, 1)
    item_off = jnp.take(iid_offset_table, iids, axis=0)                     # (B, 1)
    off = (user_off + item_off + global_offset).astype(jnp.float32)         # (B, 1)
    w = (user_imp * item_imp).astype(jnp.float32)                           # (B, K)
    side = jnp.concatenate([w, off], axis=1)                                # (B, K+1)

    # Lane-dense flattening of the reps (free contiguous reshape, native dtype
    # preserved on the HBM wire; bf16 stays bf16).
    urep2 = user_rep.reshape(B, D)
    irep2 = item_rep.reshape(B, D)

    # Constant (K, D) 0/1 expansion matrix: row k has ones over hidden slots of
    # aspect k.  Grid-constant (index_map -> (0, 0)) so it stays VMEM resident.
    expand = jnp.repeat(jnp.eye(K, dtype=jnp.float32), H, axis=1)           # (K, D)

    if block_b is None:
        block_b = _choose_block_b(B, D, rep_itemsize)
    if block_b != B:
        assert block_b % 8 == 0, "partial batch tiles must be sublane aligned"
    num_tiles = pl.cdiv(B, block_b)

    kernel = functools.partial(_rating_kernel, num_aspects=K)

    cost = pl.CostEstimate(
        flops=B * D * (3 + 2 * K),
        transcendentals=0,
        bytes_accessed=(2 * B * D * rep_itemsize      # rep streams
                        + B * (K + 1) * 4             # packed side operands
                        + B * 4                       # output
                        + K * D * 4))                 # expansion matrix

    out = pl.pallas_call(
        kernel,
        out_shape=jax.ShapeDtypeStruct((num_tiles, 1, block_b), jnp.float32),
        grid=(num_tiles,),
        in_specs=[
            pl.BlockSpec((block_b, D), lambda i: (i, 0)),        # user reps (flat)
            pl.BlockSpec((block_b, D), lambda i: (i, 0)),        # item reps (flat)
            pl.BlockSpec((block_b, K + 1), lambda i: (i, 0)),    # [w | offsets]
            pl.BlockSpec((K, D), lambda i: (0, 0)),              # expansion matrix (resident)
        ],
        out_specs=pl.BlockSpec((1, 1, block_b), lambda i: (i, 0, 0)),
        compiler_params=pltpu.CompilerParams(
            dimension_semantics=("parallel",),                   # dual-TC on v7x
            vmem_limit_bytes=32 * 1024 * 1024),                  # raise v5e's 16 MiB default
        cost_estimate=cost,
    )(urep2, irep2, side, expand)

    # Lane-dense output rows -> flat (B,) prediction (tail padding sliced off).
    return out.reshape(-1)[:B]


def rating_prediction_ref(user_rep, item_rep, user_imp, item_imp, uids, iids,
                          uid_offset_table, iid_offset_table, global_offset):
    """Pure-JAX reference mirroring the PyTorch forward exactly (eval mode)."""
    user_off = uid_offset_table[uids]          # (B, 1)
    item_off = iid_offset_table[iids]          # (B, 1)
    ur = jnp.transpose(user_rep, (1, 0, 2))    # (K, B, H)
    ir = jnp.transpose(item_rep, (1, 0, 2))    # (K, B, H)
    cols = []
    for k in range(NUM_ASPECTS):
        u = ur[k][:, None, :]                  # (B, 1, H)
        v = ir[k][:, :, None]                  # (B, H, 1)
        cols.append(jnp.matmul(u, v)[:, :, 0]) # (B, 1)
    pred = jnp.concatenate(cols, axis=1)       # (B, K)
    pred = user_imp * item_imp * pred
    pred = jnp.sum(pred, axis=1, keepdims=True)
    pred = pred + user_off + item_off + global_offset
    return pred[:, 0]


if __name__ == "__main__":
    K = NUM_ASPECTS
    user_num, item_num = 10, 12

    def make_inputs(key, B, H, rep_dtype):
        ks = jax.random.split(key, 9)
        user_rep = jax.random.normal(ks[0], (B, K, H), dtype=jnp.float32).astype(rep_dtype)
        item_rep = jax.random.normal(ks[1], (B, K, H), dtype=jnp.float32).astype(rep_dtype)
        user_imp = jax.nn.softmax(jax.random.normal(ks[2], (B, K), dtype=jnp.float32), axis=-1)
        item_imp = jax.nn.softmax(jax.random.normal(ks[3], (B, K), dtype=jnp.float32), axis=-1)
        uids = jax.random.randint(ks[4], (B,), 0, user_num + 2, dtype=jnp.int32)
        iids = jax.random.randint(ks[5], (B,), 0, item_num + 2, dtype=jnp.int32)
        global_offset = jax.random.normal(ks[6], (1,), dtype=jnp.float32) * 0.1
        uid_tab = jax.random.normal(ks[7], (user_num + 2, 1), dtype=jnp.float32) * 0.1
        iid_tab = jax.random.normal(ks[8], (item_num + 2, 1), dtype=jnp.float32) * 0.1
        return (user_rep, item_rep, user_imp, item_imp, uids, iids,
                uid_tab, iid_tab, global_offset)

    # Test 1: small f32 batch, single full-batch tile (auto block_b).
    args = make_inputs(jax.random.PRNGKey(0), B=4, H=32, rep_dtype=jnp.float32)
    out = jax.block_until_ready(rating_prediction(*args))
    ref = rating_prediction_ref(*args)
    assert out.shape == (4,)
    assert jnp.allclose(out, ref, atol=2e-5, rtol=2e-5), (out, ref)

    # Test 2: bf16 reps on the wire + forced small tile -> multi-step grid with a
    # partial tail block (20 rows, block_b=8 -> grid of 3) and lane-dense output.
    args2 = make_inputs(jax.random.PRNGKey(1), B=20, H=32, rep_dtype=jnp.bfloat16)
    out2 = jax.block_until_ready(rating_prediction(*args2, block_b=8))
    ref2 = rating_prediction_ref(args2[0].astype(jnp.float32),
                                 args2[1].astype(jnp.float32), *args2[2:])
    assert out2.shape == (20,)
    assert jnp.allclose(out2, ref2, atol=1e-4, rtol=1e-4), (out2, ref2)

    print("KERNEL_OK")
</pallas_src>

<mosaic_0001>
module attributes {stable_mosaic.version = 11 : i64} {
  func.func @_rating_kernel(%arg0: i32, %arg1: memref<4x160xf32, #tpu.memory_space<vmem>>, %arg2: memref<4x160xf32, #tpu.memory_space<vmem>>, %arg3: memref<4x6xf32, #tpu.memory_space<vmem>>, %arg4: memref<5x160xf32, #tpu.memory_space<vmem>>, %arg5: memref<1x1x4xf32, #tpu.memory_space<vmem>>) attributes {dimension_semantics = [#tpu.dimension_semantics<parallel>], iteration_bounds = array<i64: 1>, scalar_prefetch = 0 : i64, scratch_operands = 0 : i64, tpu.core_type = #tpu.core_type<tc>, window_params = [{transform_indices = @transform_0, window_bounds = array<i64: 4, 160>}, {transform_indices = @transform_1, window_bounds = array<i64: 4, 160>}, {transform_indices = @transform_2, window_bounds = array<i64: 4, 6>}, {pipeline_mode = #tpu.pipeline_mode<synchronous>, transform_indices = @transform_3, window_bounds = array<i64: 5, 160>}, {transform_indices = @transform_4, window_bounds = array<i64: 1, 1, 4>}]} {
    %c0 = arith.constant 0 : index
    %c0_0 = arith.constant 0 : index
    %0 = vector.load %arg1[%c0, %c0_0] : memref<4x160xf32, #tpu.memory_space<vmem>>, vector<4x160xf32>
    %c0_1 = arith.constant 0 : index
    %c0_2 = arith.constant 0 : index
    %1 = vector.load %arg2[%c0_1, %c0_2] : memref<4x160xf32, #tpu.memory_space<vmem>>, vector<4x160xf32>
    %c0_3 = arith.constant 0 : index
    %c0_4 = arith.constant 0 : index
    %2 = vector.load %arg3[%c0_3, %c0_4] : memref<4x6xf32, #tpu.memory_space<vmem>>, vector<4x6xf32>
    %3 = vector.extract_strided_slice %2 {offsets = [0, 0], sizes = [4, 5], strides = [1, 1]} : vector<4x6xf32> to vector<4x5xf32>
    %4 = vector.extract_strided_slice %2 {offsets = [0, 5], sizes = [4, 1], strides = [1, 1]} : vector<4x6xf32> to vector<4x1xf32>
    %5 = vector.shape_cast %4 : vector<4x1xf32> to vector<4xf32>
    %c0_5 = arith.constant 0 : index
    %c0_6 = arith.constant 0 : index
    %6 = vector.load %arg4[%c0_5, %c0_6] : memref<5x160xf32, #tpu.memory_space<vmem>>, vector<5x160xf32>
    %cst = arith.constant dense<0.000000e+00> : vector<4x160xf32>
    %7 = tpu.matmul %3, %6, %cst {dimension_numbers = #tpu.dot_dimension_numbers<[1], [0], [0], [1], [0, 0, 1, 1], [], []>} : vector<4x5xf32>, vector<5x160xf32>, vector<4x160xf32> -> vector<4x160xf32>
    %8 = arith.mulf %0, %1 : vector<4x160xf32>
    %9 = arith.mulf %8, %7 : vector<4x160xf32>
    %cst_7 = arith.constant dense<0.000000e+00> : vector<4xf32>
    %10 = vector.multi_reduction <add>, %9, %cst_7 [1] : vector<4x160xf32> to vector<4xf32>
    %11 = arith.addf %10, %5 : vector<4xf32>
    %12 = vector.shape_cast %11 : vector<4xf32> to vector<1x1x4xf32>
    %c0_8 = arith.constant 0 : index
    %c0_9 = arith.constant 0 : index
    %c0_10 = arith.constant 0 : index
    %13 = vector.load %arg5[%c0_8, %c0_9, %c0_10] : memref<1x1x4xf32, #tpu.memory_space<vmem>>, vector<1x1x4xf32>
    tpu.vector_store %arg5[%c0_8, %c0_9, %c0_10], %12 {strides = array<i32>} : memref<1x1x4xf32, #tpu.memory_space<vmem>>, vector<1x1x4xf32>,
    return
  }
  func.func @transform_0(%arg0: i32) -> (i32, i32) {
    %c0_i32 = arith.constant 0 : i32
    %c0_i32_0 = arith.constant 0 : i32
    return %arg0, %c0_i32 : i32, i32
  }
  func.func @transform_1(%arg0: i32) -> (i32, i32) {
    %c0_i32 = arith.constant 0 : i32
    %c0_i32_0 = arith.constant 0 : i32
    return %arg0, %c0_i32 : i32, i32
  }
  func.func @transform_2(%arg0: i32) -> (i32, i32) {
    %c0_i32 = arith.constant 0 : i32
    %c0_i32_0 = arith.constant 0 : i32
    return %arg0, %c0_i32 : i32, i32
  }
  func.func @transform_3(%arg0: i32) -> (i32, i32) {
    %c0_i32 = arith.constant 0 : i32
    %c0_i32_0 = arith.constant 0 : i32
    %c0_i32_1 = arith.constant 0 : i32
    return %c0_i32, %c0_i32_0 : i32, i32
  }
  func.func @transform_4(%arg0: i32) -> (i32, i32, i32) {
    %c0_i32 = arith.constant 0 : i32
    %c0_i32_0 = arith.constant 0 : i32
    %c0_i32_1 = arith.constant 0 : i32
    return %arg0, %c0_i32, %c0_i32_0 : i32, i32, i32
  }
}

</mosaic_0001>

<bundles_post_ra>
// kernel: tpu_custom_call.1
= control target key start
LH: loop header
LB: loop body
LE: loop exit
PB: predicated region body
PF: predicated region fallthrough
CT: control target
= control target key end

     0   :  { %9 = vsyncpa [#allocation3], 0  ;;  %s372_s0 = inlined_call_operand.hbm [shape: f32[4,160], index: 0, kind: input, shape index: {}]   ;;  %s373_s1 = inlined_call_operand.hbm [shape: f32[4,160], index: 1, kind: input, shape index: {}]   ;;  %s374_s2 = inlined_call_operand.vmem [shape: f32[4,6], index: 2, kind: input, shape index: {}]   ;;  %s375_s3 = inlined_call_operand.hbm [shape: f32[5,160], index: 3, kind: input, shape index: {}]   ;;  %s376_s4 = inlined_call_operand.hbm [shape: f32[1,1,4], index: 4, kind: output, shape index: {}]  }
   0x1   :  { %10 = vsyncpa [#allocation6], 0 }
   0x2   :  { %11 = vsyncpa [#allocation4], 0  ;;  %s290_s15 = smov [#allocation5]   ;;  %s291_s17 = smov [#allocation2]  }
   0x3   :  { %s28_s16 = sshll.u32 %s290_s15, 4  ;;  %s18_s18 = sshll.u32 %s291_s17, 4  ;;  %s29_s16 = int_to_ptr.vmem [resolvable:$true] %s28_s16  ;;  %s19_s18 = int_to_ptr.vmem [resolvable:$true] %s18_s18 }
   0x4   :  { %s196_s21 = scalar_lea.hbm %s373_s1, 128 }
   0x5   :  { %p197_p0 = scmp.ne.s32.totalorder %s373_s1, %s196_s21  ;;  %p200_p1 = scmp.lt.u32.totalorder %s196_s21, %s373_s1 }
   0x7   :  { %p202_p2 = pnand %p200_p1, %p197_p0 }
   0x9   :  { %205 = shalt.err (!%p202_p2)
}
   0xa   :  { %s206_s26 = scalar_lea.vmem %s29_s16, 128  ;;  %p211_p4 = scmp.lt.s32.totalorder %s29_s16, %s29_s16 }
   0xb   :  { %p207_p3 = scmp.ne.s32.totalorder %s29_s16, %s206_s26  ;;  %p212_p5 = scmp.lt.s32.totalorder %s206_s26, %s206_s26 }
   0xd   :  { %p213_p6 = por %p212_p5, %p211_p4 }
   0xf   :  { %p214_p7 = pnand %p213_p6, %p207_p3 }
  0x11   :  { %217 = shalt.err (!%p214_p7)
}
  0x12   :  { %31 = dma.hbm_to_vmem [thread:$0]  %s373_s1, 128, %s29_s16, [#allocation6]  }
  0x13   :  { %s218_s5 = scalar_lea.hbm %s372_s0, 128 }
  0x14   :  { %p219_p8 = scmp.ne.s32.totalorder %s372_s0, %s218_s5  ;;  %p222_p9 = scmp.lt.u32.totalorder %s218_s5, %s372_s0 }
  0x16   :  { %p224_p10 = pnand %p222_p9, %p219_p8 }
  0x18   :  { %227 = shalt.err (!%p224_p10)
}
  0x19   :  { %s228_s10 = scalar_lea.vmem %s19_s18, 128  ;;  %p233_p12 = scmp.lt.s32.totalorder %s19_s18, %s19_s18 }
  0x1a   :  { %p229_p11 = scmp.ne.s32.totalorder %s19_s18, %s228_s10  ;;  %p234_p13 = scmp.lt.s32.totalorder %s228_s10, %s228_s10 }
  0x1c   :  { %p235_p0 = por %p234_p13, %p233_p12 }
  0x1e   :  { %p236_p1 = pnand %p235_p0, %p229_p11 }
  0x20   :  { %239 = shalt.err (!%p236_p1)
}
  0x21   :  { %21 = dma.hbm_to_vmem [thread:$0]  %s372_s0, 128, %s19_s18, [#allocation3]  }
  0x22   :  { %s292_s12 = smov [#allocation7]   ;;  %s240_s16 = scalar_lea.hbm %s375_s3, 256 }
  0x23   :  { %s40_s13 = sshll.u32 %s292_s12, 4  ;;  %p241_p2 = scmp.ne.s32.totalorder %s375_s3, %s240_s16  ;;  %s41_s13 = int_to_ptr.vmem [resolvable:$true] %s40_s13 }
  0x24   :  { %p244_p3 = scmp.lt.u32.totalorder %s240_s16, %s375_s3 }
  0x26   :  { %p246_p4 = pnand %p244_p3, %p241_p2 }
  0x28   :  { %249 = shalt.err (!%p246_p4)
}
  0x29   :  { %s250_s22 = scalar_lea.vmem %s41_s13, 256  ;;  %p255_p6 = scmp.lt.s32.totalorder %s41_s13, %s41_s13 }
  0x2a   :  { %p251_p5 = scmp.ne.s32.totalorder %s41_s13, %s250_s22  ;;  %p256_p7 = scmp.lt.s32.totalorder %s250_s22, %s250_s22 }
  0x2c   :  { %p257_p8 = por %p256_p7, %p255_p6 }
  0x2e   :  { %p258_p9 = pnand %p257_p8, %p251_p5 }
  0x30   :  { %261 = shalt.err (!%p258_p9)
}
  0x31   :  { %43 = dma.hbm_to_vmem [thread:$0]  %s375_s3, 256, %s41_s13, [#allocation6]  }
  0x32   :  { %284 = dma.done.wait [#allocation3], 128  }
  0x33   :  { %285 = vsyncadd [#allocation3], 4294967168 }
  0x34   :  { %286 = dma.done.wait [#allocation6], 384  }
  0x35   :  { %287 = vsyncadd [#allocation6], 4294966912  ;;  %v293_v0 = vmov 0.0   ;;  %vm62_vm0 = vcmask 1044480   ;;  %vm58_vm1 = vcmask 39936   ;;  %v53_v4 = vld [vmem:[#allocation2] sm:$0xff]  ;;  %v161_v18 = vlaneseq }
  0x36   :  { %133 = vmatprep.mubr.f32.mxu0 %v293_v0  ;;  %v57_v1 = vld [vmem:[#allocation7 + $0x8] sm:$0x1f]  ;;  %v56_v2 = vld [vmem:[#allocation7] sm:$0x1f]  ;;  %v55_v3 = vld [vmem:[%s374_s2] sm:$0xf] }
  0x37   :  { %186 = vmatprep.subr.msk.mxu0 %vm62_vm0, %v57_v1  ;;  %v54_v5 = vld [vmem:[#allocation5] sm:$0xff]  ;;  %vm149_vm2 = vcmask 1043456   ;;  %vm151_vm3 = vcmask 257024   ;;  %v294_v15 = vmov 5   ;;  %v162_v19 = vand.u32 127, %v161_v18  ;;  %s295_s2 = smov [#allocation8]  }
  0x38   :  { %187 = vmatpush1.msk.msra.mxu0 %vm62_vm0, %v56_v2  ;;  %v140_v7 = vmul.f32 %v54_v5, %v53_v4  ;;  %195 = vset.pattern.permute.xlu0 %v294_v15  ;;  %v164_v20 = vshrl.u32 %v161_v18, 7  ;;  %s176_s3 = sshll.u32 %s295_s2, 4  ;;  %vm168_vm4 = vcmask 24576   ;;  %s177_s3 = int_to_ptr.vmem [resolvable:$true] %s176_s3 }
  0x39   :  { %188 = vmatmul.mubr.msk.f32.vlgmr.msra.gmra.mrb[0].mxu0 %vm58_vm1, %v55_v3  ;;  %s262_s25 = scalar_lea.vmem %s177_s3, 16  ;;  %s266_s26 = scalar_lea.vmem %s177_s3, 32 }
  0x3a   :  { %v165_v21 = vsub.s32 %v162_v19, %v164_v20  ;;  %p263_p10 = scmp.ne.s32.totalorder %s177_s3, %s262_s25  ;;  %p267_p11 = scmp.lt.s32.totalorder %s177_s3, %s177_s3 }
  0x3b   :  { %p268_p12 = scmp.lt.s32.totalorder %s266_s26, %s262_s25 }
  0x3d   :  { %p269_p13 = por %p268_p12, %p267_p11 }
  0x3f   :  { %p270_p0 = pnand %p269_p13, %p263_p10 }
 0x10c   :  { %v135_v6 = vpop.f32.mrb[0].mxu0 }
 0x10d   :  { %v137_v8 = vpop.f32.mrb[1].mxu0 }
 0x10e   :  { %v143_v9 = vcombine.low %v135_v6, %v137_v8 }
 0x110   :  { %v145_v10 = vmul.f32 %v143_v9, %v140_v7 }
 0x112   :  { %v147_v11 = vcombine.high %v145_v10, %v145_v10  ;;  %v150_v12 = vsel %vm149_vm2, %v145_v10, 0.0 }
 0x114   :  { %v152_v13 = vsel %vm151_vm3, %v147_v11, 0.0 }
 0x115   :  { %v153_v14 = vadd.f32 %v152_v13, %v150_v12 }
 0x117   :  { %154 = vadd.xlane.f32.xlu0 %v153_v14 }
 0x1a4   :  { %v155_v16 = vpop.xlane.xlu0 %154 }
 0x1a5   :  { %v156_v17 = vadd.f32 %v155_v16, %v55_v3 }
 0x1a7   :  { %159 = vperm.xlu0 %195, %v156_v17  }
 0x226   :  { %v160_v22 = vpop.permute.xlu0 %159 }
 0x227   :  { %v166_v23 = vrot.slane %v160_v22, %v165_v21 }
 0x229   :  { %169 = vst.msk [vmem:[#allocation8] sm:$0x1] %vm168_vm4, %v166_v23 }
 0x22a   :  { %273 = shalt.err (!%p270_p0)
}
 0x22b   :  { %s274_s29 = scalar_lea.hbm %s376_s4, 16 }
 0x22c   :  { %p275_p1 = scmp.ne.s32.totalorder %s376_s4, %s274_s29  ;;  %p278_p2 = scmp.lt.u32.totalorder %s274_s29, %s376_s4 }
 0x22e   :  { %p280_p3 = pnand %p278_p2, %p275_p1 }
 0x230   :  { %283 = shalt.err (!%p280_p3)
}
 0x231   :  { %179 = dma.vmem_to_hbm [thread:$0]  %s177_s3, 16, %s376_s4, [#allocation4]  }
 0x232   :  { %288 = dma.done.wait [#allocation4], 16  }
 0x233   :  { %289 = vsyncadd [#allocation4], 4294967280 }
 0x234   :  { %183 = vsyncpa [#allocation3], 1 }
 0x235   :  { %184 = vsyncpa [#allocation6], 1 }
 0x236   :  { %185 = vsyncpa [#allocation4], 1 }

</bundles_post_ra>
